<compile_context>
chip_gen: v7x
topology: tpu7x:2x2x1
jax: 0.10.0
libtpu: 0.0.40
codegen_flags: <defaults>
</compile_context>

<pallas_src>
import functools

import jax
import jax.numpy as jnp
from jax.experimental import pallas as pl
from jax.experimental.pallas import tpu as pltpu


def _round_up(x, m):
    return ((x + m - 1) // m) * m


def _head_kernel(x_ref, w_ref, b_ref, o_ref):
    """Fused y = tanh(x @ W + b).

    x_ref: (Bt, K)   f32 feature rows (full batch, or one batch tile)
    w_ref: (K, Np)   bf16 weight, transposed + lane-padded at init
    b_ref: (1, Np)   f32 bias (lane-padded)
    o_ref: (Bt, Np)  f32 output
    """
    xb = x_ref[...].astype(w_ref.dtype)  # cheap VPU cast -> native bf16 MXU path
    acc = jnp.dot(xb, w_ref[...], preferred_element_type=jnp.float32)
    o_ref[...] = jnp.tanh(acc + b_ref[...]).astype(o_ref.dtype)


def _classifier_head(x, w_pad, b_pad):
    """Fused Linear + Tanh head.  Everything resident in VMEM; no K split."""
    B, K = x.shape
    Kw, Np = w_pad.shape
    assert K == Kw, (K, Kw)

    cost = pl.CostEstimate(
        flops=2 * B * K * Np,
        transcendentals=B * Np,
        bytes_accessed=B * K * 4 + K * Np * 2 + Np * 4 + B * Np * 4,
    )

    if B <= 256:
        # Small batch: single un-gridded MXU pass, fused bias+tanh epilogue.
        return pl.pallas_call(
            _head_kernel,
            out_shape=jax.ShapeDtypeStruct((B, Np), jnp.float32),
            in_specs=[
                pl.BlockSpec(memory_space=pltpu.MemorySpace.VMEM),
                pl.BlockSpec(memory_space=pltpu.MemorySpace.VMEM),
                pl.BlockSpec(memory_space=pltpu.MemorySpace.VMEM),
            ],
            out_specs=pl.BlockSpec(memory_space=pltpu.MemorySpace.VMEM),
            cost_estimate=cost,
        )(x, w_pad, b_pad)

    # Large batch: grid over the batch dim so v7x's two TensorCores both work.
    tb = 256
    return pl.pallas_call(
        _head_kernel,
        out_shape=jax.ShapeDtypeStruct((B, Np), jnp.float32),
        grid=(pl.cdiv(B, tb),),
        in_specs=[
            pl.BlockSpec((tb, K), lambda i: (i, 0)),
            pl.BlockSpec((K, Np), lambda i: (0, 0)),   # weight stays resident
            pl.BlockSpec((1, Np), lambda i: (0, 0)),
        ],
        out_specs=pl.BlockSpec((tb, Np), lambda i: (i, 0)),
        compiler_params=pltpu.CompilerParams(dimension_semantics=("parallel",)),
        cost_estimate=cost,
    )(x, w_pad, b_pad)


def prepare_head_params(w_torch, bias):
    """One-time (init) parameter prep:
      * transpose PyTorch (out, in) weight -> (in, out) = (K, N),
      * zero-pad the `bit` axis to a multiple of 128 (lane-dense output),
      * cast the weight to bf16 (bias stays f32 for the f32 epilogue).
    """
    N, K = w_torch.shape
    Np = _round_up(N, 128)
    w_pad = (
        jnp.zeros((K, Np), jnp.bfloat16)
        .at[:, :N]
        .set(w_torch.T.astype(jnp.bfloat16))
    )
    b_pad = jnp.zeros((1, Np), jnp.float32).at[0, :N].set(bias.astype(jnp.float32))
    return w_pad, b_pad


@functools.partial(jax.jit, static_argnames=("bit",))
def cnn_model_forward(feature_map_nchw, w_pad, b_pad, *, bit):
    """Mirror of cnn_model.forward (resnet34 branch) after self.features.

    feature_map_nchw: (B, 512, 1, 1) — output of the resnet34 feature stack.
    w_pad:            (512, Np)      — Linear weight, transposed, bf16, padded.
    b_pad:            (1, Np)        — Linear bias, f32, lane-padded.
    """
    B = feature_map_nchw.shape[0]
    # f = f.view(f.size(0), -1)  (row-major flatten, identical to torch .view)
    f2d = feature_map_nchw.reshape(B, -1)
    y_pad = _classifier_head(f2d, w_pad, b_pad)
    return y_pad[:, :bit]


if __name__ == "__main__":
    B = 2          # batch
    C = 512        # resnet34 feature channels (hardcoded by the module)
    BIT = 32       # hash-code length `bit`

    key = jax.random.PRNGKey(0)
    k_x, k_w, k_b = jax.random.split(key, 3)

    # Synthetic output of self.features(x): (B, 512, 1, 1) NCHW feature map.
    feat = jax.random.normal(k_x, (B, C, 1, 1), dtype=jnp.float32)

    # Deterministic Linear(512, bit) parameters (PyTorch layout: (out, in)).
    bound = 1.0 / jnp.sqrt(jnp.float32(C))
    w_torch = jax.random.uniform(
        k_w, (BIT, C), dtype=jnp.float32, minval=-bound, maxval=bound
    )
    bias = jax.random.uniform(
        k_b, (BIT,), dtype=jnp.float32, minval=-bound, maxval=bound
    )

    # One-time parameter prep (done at module init in a real deployment).
    w_pad, b_pad = prepare_head_params(w_torch, bias)

    y = cnn_model_forward(feat, w_pad, b_pad, bit=BIT)
    y = jax.block_until_ready(y)

    # Pure-JAX f32 reference of the same forward for a correctness check.
    # Tolerance is loosened because the kernel's matmul inputs are bf16.
    ref = jnp.tanh(feat.reshape(B, -1) @ w_torch.T + bias)
    assert y.shape == (B, BIT)
    assert jnp.allclose(y, ref, atol=2e-2, rtol=2e-2), "mismatch vs reference"

    print("KERNEL_OK")
</pallas_src>

<mosaic_0001>
module attributes {stable_mosaic.version = 11 : i64} {
  func.func @_head_kernel(%arg0: memref<2x512xf32, #tpu.memory_space<vmem>>, %arg1: memref<512x128xbf16, #tpu.memory_space<vmem>>, %arg2: memref<1x128xf32, #tpu.memory_space<vmem>>, %arg3: memref<2x128xf32, #tpu.memory_space<vmem>>) attributes {dimension_semantics = [], scalar_prefetch = 0 : i64, scratch_operands = 0 : i64, tpu.core_type = #tpu.core_type<tc>} {
    %c0 = arith.constant 0 : index
    %c0_0 = arith.constant 0 : index
    %0 = vector.load %arg0[%c0, %c0_0] : memref<2x512xf32, #tpu.memory_space<vmem>>, vector<2x512xf32>
    %1 = arith.truncf %0 : vector<2x512xf32> to vector<2x512xbf16>
    %c0_1 = arith.constant 0 : index
    %c0_2 = arith.constant 0 : index
    %2 = vector.load %arg1[%c0_1, %c0_2] : memref<512x128xbf16, #tpu.memory_space<vmem>>, vector<512x128xbf16>
    %cst = arith.constant dense<0.000000e+00> : vector<2x128xf32>
    %3 = tpu.matmul %1, %2, %cst {dimension_numbers = #tpu.dot_dimension_numbers<[1], [0], [0], [1], [0, 0, 1, 1], [], []>} : vector<2x512xbf16>, vector<512x128xbf16>, vector<2x128xf32> -> vector<2x128xf32>
    %c0_3 = arith.constant 0 : index
    %c0_4 = arith.constant 0 : index
    %4 = vector.load %arg2[%c0_3, %c0_4] : memref<1x128xf32, #tpu.memory_space<vmem>>, vector<1x128xf32>
    %5 = vector.broadcast %4 : vector<1x128xf32> to vector<2x128xf32>
    %6 = arith.addf %3, %5 : vector<2x128xf32>
    %7 = math.tanh %6 : vector<2x128xf32>
    %c0_5 = arith.constant 0 : index
    %c0_6 = arith.constant 0 : index
    %8 = vector.load %arg3[%c0_5, %c0_6] : memref<2x128xf32, #tpu.memory_space<vmem>>, vector<2x128xf32>
    tpu.vector_store %arg3[%c0_5, %c0_6], %7 {strides = array<i32>} : memref<2x128xf32, #tpu.memory_space<vmem>>, vector<2x128xf32>,
    return
  }
}

</mosaic_0001>

<bundles_post_ra>
// kernel: cnn_model_forward.1
= control target key start
LH: loop header
LB: loop body
LE: loop exit
PB: predicated region body
PF: predicated region fallthrough
CT: control target
= control target key end

     0   :  { %8 = vsyncpa [#allocation3], 0  ;;  %s637_s0 = inlined_call_operand.vmem [shape: f32[2,512], index: 0, kind: input, shape index: {}]   ;;  %s638_s1 = inlined_call_operand.hbm [shape: bf16[512,128], index: 1, kind: input, shape index: {}]   ;;  %s639_s2 = inlined_call_operand.vmem [shape: f32[1,128], index: 2, kind: input, shape index: {}]   ;;  %s640_s3 = inlined_call_operand.hbm [shape: f32[2,128], index: 3, kind: output, shape index: {}]  }
   0x1   :  { %9 = vsyncpa [#allocation4], 0  ;;  %s582_s12 = smov [#allocation2]   ;;  %s534_s16 = scalar_lea.hbm %s638_s1, 4096 }
   0x2   :  { %s17_s13 = sshll.u32 %s582_s12, 4  ;;  %p535_p0 = scmp.ne.s32.totalorder %s638_s1, %s534_s16  ;;  %s18_s13 = int_to_ptr.vmem [resolvable:$true] %s17_s13 }
   0x3   :  { %p538_p1 = scmp.lt.u32.totalorder %s534_s16, %s638_s1 }
   0x5   :  { %p540_p2 = pnand %p538_p1, %p535_p0 }
   0x7   :  { %543 = shalt.err (!%p540_p2)
}
   0x8   :  { %s544_s21 = scalar_lea.vmem %s18_s13, 4096  ;;  %p549_p4 = scmp.lt.s32.totalorder %s18_s13, %s18_s13 }
   0x9   :  { %p545_p3 = scmp.ne.s32.totalorder %s18_s13, %s544_s21  ;;  %p550_p5 = scmp.lt.s32.totalorder %s544_s21, %s544_s21 }
   0xb   :  { %p551_p6 = por %p550_p5, %p549_p4 }
   0xd   :  { %p552_p7 = pnand %p551_p6, %p545_p3 }
   0xf   :  { %555 = shalt.err (!%p552_p7)
}
  0x10   :  { %s583_s22 = smov 64   ;;  %s584_s23 = smov 4  }
  0x11   :  { %23 = dma.hbm_to_vmem [thread:$0]  %s638_s1, 4096, %s18_s13, [#allocation3], %s583_s22, %s583_s22, %s584_s23  }
  0x12   :  { %578 = dma.done.wait [#allocation3], 4096  }
  0x13   :  { %579 = vsyncadd [#allocation3], 4294963200  ;;  %v499_v0 = vld [vmem:[#allocation2 + $0x40] sm:$0xff]   ;;  %v503_v4 = vld [vmem:[#allocation2 + $0x48] sm:$0xff]   ;;  %v585_v22 = vmov 1983009808   ;;  %v36_v24 = vlaneseq }
  0x14   :  { %v500_v1 = vld [vmem:[#allocation2 + $0xc0] sm:$0xff]   ;;  %450 = vmatprep.subr.bf16.mxu0 %v499_v0  ;;  %v504_v5 = vld [vmem:[#allocation2 + $0xc8] sm:$0xff]   ;;  %v507_v8 = vld [vmem:[#allocation2 + $0x50] sm:$0xff]   ;;  %v34_v23 = vunpack.c.l.s4 %v585_v22 }
  0x15   :  { %v501_v2 = vld [vmem:[#allocation2] sm:$0xff]   ;;  %472 = vmatprep.subr.bf16.mxu1 %v500_v1  ;;  %v505_v6 = vld [vmem:[#allocation2 + $0x8] sm:$0xff]   ;;  %v508_v9 = vld [vmem:[#allocation2 + $0xd0] sm:$0xff]   ;;  %v37_v30 = vshrl.u32 %v36_v24, 7 }
  0x16   :  { %v502_v3 = vld [vmem:[#allocation2 + $0x80] sm:$0xff]   ;;  %451 = vmatpush3.bf16.msra.mxu0 %v501_v2  ;;  %v506_v7 = vld [vmem:[#allocation2 + $0x88] sm:$0xff]   ;;  %v509_v10 = vld [vmem:[#allocation2 + $0x10] sm:$0xff]   ;;  %v35_v29 = vunpack.c.0.s8 %v34_v23 }
  0x17   :  { %473 = vmatpush3.bf16.msra.mxu1 %v502_v3  ;;  %452 = vmatprep.subr.bf16.mxu0 %v503_v4  ;;  %v510_v11 = vld [vmem:[#allocation2 + $0x90] sm:$0xff]   ;;  %v511_v12 = vld [vmem:[#allocation2 + $0x58] sm:$0xff]   ;;  %v515_v16 = vld [vmem:[#allocation2 + $0x60] sm:$0xff]  }
  0x18   :  { %474 = vmatprep.subr.bf16.mxu1 %v504_v5  ;;  %v512_v13 = vld [vmem:[#allocation2 + $0xd8] sm:$0xff]   ;;  %v516_v17 = vld [vmem:[#allocation2 + $0xe0] sm:$0xff]   ;;  %v519_v20 = vld [vmem:[#allocation2 + $0x68] sm:$0xff]   ;;  %v38_v35 = vsub.s32 %v35_v29, %v37_v30 }
  0x19   :  { %v513_v14 = vld [vmem:[#allocation2 + $0x18] sm:$0xff]   ;;  %v517_v18 = vld [vmem:[#allocation2 + $0x20] sm:$0xff]   ;;  %v520_v21 = vld [vmem:[#allocation2 + $0xe8] sm:$0xff]  }
  0x1a   :  { %453 = vmatpush3.bf16.msra.mxu0 %v505_v6  ;;  %v514_v15 = vld [vmem:[#allocation2 + $0x98] sm:$0xff]   ;;  %v518_v19 = vld [vmem:[#allocation2 + $0xa0] sm:$0xff]   ;;  %v521_v25 = vld [vmem:[#allocation2 + $0x28] sm:$0xff]  }
  0x1b   :  { %475 = vmatpush3.bf16.msra.mxu1 %v506_v7  ;;  %454 = vmatprep.subr.bf16.mxu0 %v507_v8  ;;  %v522_v26 = vld [vmem:[#allocation2 + $0xa8] sm:$0xff]   ;;  %v523_v27 = vld [vmem:[#allocation2 + $0x70] sm:$0xff]   ;;  %v527_v33 = vld [vmem:[#allocation2 + $0x78] sm:$0xff]  }
  0x1c   :  { %476 = vmatprep.subr.bf16.mxu1 %v508_v9  ;;  %v524_v28 = vld [vmem:[#allocation2 + $0xf0] sm:$0xff]   ;;  %v528_v34 = vld [vmem:[#allocation2 + $0xf8] sm:$0xff]   ;;  %v30_v38 = vld [vmem:[%s637_s0] sm:$0xff]  ;;  %s586_s0 = smov [#allocation5]  }
  0x1d   :  { %v525_v31 = vld [vmem:[#allocation2 + $0x30] sm:$0xff]   ;;  %v529_v36 = vld [vmem:[#allocation2 + $0x38] sm:$0xff]   ;;  %v39_v39 = vrot.slane %v30_v38, %v38_v35  ;;  %v32_v40 = vcombine.high %v30_v38, %v30_v38  ;;  %v417_v49 = vld [vmem:[%s639_s2] ss:$0 sm:$0xff]  ;;  %s408_s29 = sshll.u32 %s586_s0, 4  ;;  %s409_s29 = int_to_ptr.vmem [resolvable:$true] %s408_s29 }
  0x1e   :  { %455 = vmatpush3.bf16.msra.mxu0 %v509_v10  ;;  %v526_v32 = vld [vmem:[#allocation2 + $0xb0] sm:$0xff]   ;;  %v530_v37 = vld [vmem:[#allocation2 + $0xb8] sm:$0xff]   ;;  %s556_s30 = scalar_lea.vmem %s409_s29, 32  ;;  %p561_p9 = scmp.lt.s32.totalorder %s409_s29, %s409_s29 }
  0x1f   :  { %477 = vmatpush3.bf16.msra.mxu1 %v510_v11  ;;  %456 = vmatprep.subr.bf16.mxu0 %v511_v12  ;;  %v47_v41 = vcombine.high %v39_v39, %v39_v39  ;;  %v46_v42 = vrot.slane %v32_v40, %v38_v35  ;;  %v53_v43 = vpack.c.bf16 %v39_v39, %v39_v39  ;;  %p557_p8 = scmp.ne.s32.totalorder %s409_s29, %s556_s30  ;;  %p562_p10 = scmp.lt.s32.totalorder %s556_s30, %s556_s30 }
  0x20   :  { %478 = vmatprep.subr.bf16.mxu1 %v512_v13 }
  0x21   :  { %v54_v44 = vpack.c.bf16 %v47_v41, %v47_v41  ;;  %v48_v45 = vcombine.high %v46_v42, %v46_v42  ;;  %v55_v46 = vpack.c.bf16 %v46_v42, %v46_v42  ;;  %p563_p11 = por %p562_p10, %p561_p9 }
  0x22   :  { %457 = vmatpush3.bf16.msra.mxu0 %v513_v14 }
  0x23   :  { %479 = vmatpush3.bf16.msra.mxu1 %v514_v15  ;;  %458 = vmatprep.subr.bf16.mxu0 %v515_v16  ;;  %v56_v47 = vpack.c.bf16 %v48_v45, %v48_v45  ;;  %p564_p12 = pnand %p563_p11, %p557_p8 }
  0x24   :  { %480 = vmatprep.subr.bf16.mxu1 %v516_v17  ;;  %352 = vmatprep.mubr.bf16.mxu0 %v54_v44 }
  0x25   :  { %392 = vmatprep.mubr.bf16.mxu1 %v56_v47 }
  0x26   :  { %459 = vmatpush3.bf16.msra.mxu0 %v517_v18 }
  0x27   :  { %481 = vmatpush3.bf16.msra.mxu1 %v518_v19  ;;  %460 = vmatprep.subr.bf16.mxu0 %v519_v20 }
  0x28   :  { %482 = vmatprep.subr.bf16.mxu1 %v520_v21 }
  0x2a   :  { %461 = vmatpush3.bf16.msra.mxu0 %v521_v25 }
  0x2b   :  { %483 = vmatpush3.bf16.msra.mxu1 %v522_v26  ;;  %462 = vmatprep.subr.bf16.mxu0 %v523_v27 }
  0x2c   :  { %484 = vmatprep.subr.bf16.mxu1 %v524_v28 }
  0x2e   :  { %463 = vmatpush3.bf16.msra.mxu0 %v525_v31 }
  0x2f   :  { %485 = vmatpush3.bf16.msra.mxu1 %v526_v32  ;;  %464 = vmatprep.subr.bf16.mxu0 %v527_v33 }
  0x30   :  { %486 = vmatprep.subr.bf16.mxu1 %v528_v34 }
  0x32   :  { %465 = vmatpush3.bf16.msra.mxu0 %v529_v36 }
  0x33   :  { %487 = vmatpush3.bf16.msra.mxu1 %v530_v37 }
  0x35   :  { %353 = vmatmul.mubr.bf16.vlgmr.msra.gmra.mrb[0].mxu0 %v53_v43 }
  0x36   :  { %393 = vmatmul.mubr.bf16.vlgmr.msra.gmra.mrb[0].mxu1 %v55_v46 }
 0x108   :  { %v466_v48 = vpop.f32.mrb[0].mxu0 }
 0x109   :  { %v467_v50 = vpop.f32.mrb[1].mxu0  ;;  %v488_v51 = vpop.f32.mrb[0].mxu1 }
 0x10a   :  { %v468_v52 = vadd.f32 %v467_v50, %v466_v48  ;;  %v469_v53 = vpop.f32.mrb[2].mxu0  ;;  %v489_v54 = vpop.f32.mrb[1].mxu1 }
 0x10b   :  { %v470_v55 = vpop.f32.mrb[3].mxu0  ;;  %v490_v57 = vadd.f32 %v489_v54, %v488_v51  ;;  %v491_v58 = vpop.f32.mrb[2].mxu1 }
 0x10c   :  { %v355_v56 = vadd.f32 %v468_v52, %v417_v49  ;;  %v492_v59 = vpop.f32.mrb[3].mxu1 }
 0x10e   :  { %v395_v60 = vadd.f32 %v490_v57, %v355_v56 }
 0x110   :  { %532 = vtanh.f32 %v395_v60 }
 0x11a   :  { %v533_v61 = vpop.eup %532 }
 0x11b   :  { %401 = vst [vmem:[#allocation5] sm:$0x3] %v533_v61 }
 0x11c   :  { %567 = shalt.err (!%p564_p12)
}
 0x11d   :  { %s568_s5 = scalar_lea.hbm %s640_s3, 32 }
 0x11e   :  { %p569_p13 = scmp.ne.s32.totalorder %s640_s3, %s568_s5  ;;  %p572_p0 = scmp.lt.u32.totalorder %s568_s5, %s640_s3 }
 0x120   :  { %p574_p1 = pnand %p572_p0, %p569_p13 }
 0x122   :  { %577 = shalt.err (!%p574_p1)
}
 0x123   :  { %411 = dma.vmem_to_hbm [thread:$0]  %s409_s29, 32, %s640_s3, [#allocation4]  }
 0x124   :  { %580 = dma.done.wait [#allocation4], 32  }
 0x125   :  { %581 = vsyncadd [#allocation4], 4294967264 }
 0x126   :  { %415 = vsyncpa [#allocation3], 1 }
 0x127   :  { %416 = vsyncpa [#allocation4], 1 }

</bundles_post_ra>
